<compile_context>
chip_gen: v7x
topology: tpu7x:2x2x1
jax: 0.10.0
libtpu: 0.0.40
codegen_flags: <defaults>
</compile_context>

<pallas_src>
import functools

import jax
import jax.numpy as jnp
from jax.experimental import pallas as pl
from jax.experimental.pallas import tpu as pltpu


def _e2e_kernel(x1_ref, x2_ref, w1_ref, w2_ref, bias_ref, o_ref):
    # x1_ref: (Bt, d, K)  with x1[t, i, c*d + j] = x[t, c, i, j]
    # x2_ref: (Bt, d, K)  with x2[t, j, c*d + i] = x[t, c, i, j]
    # w1_ref: (P, K)      row-conv weights   (K = C*d, flattened over (c, j))
    # w2_ref: (P, K)      col-conv weights   (flattened over (c, i))
    # bias_ref: (P, 1)    combined bias b1 + b2
    # o_ref:  (Bt, P, d, d)
    w1 = w1_ref[...]
    w2 = w2_ref[...]
    bias = bias_ref[...]                      # (P, 1)
    bt = o_ref.shape[0]                       # static batch tile

    # K is on the last (lane) dim of both operands -> MXU-friendly, no transpose.
    contract_last = (((1,), (1,)), ((), ()))

    for t in range(bt):                       # static unroll over batch tile
        # row term: a[p, i] = sum_k w1[p, k] * x1[t, i, k]
        a = jax.lax.dot_general(w1, x1_ref[t], contract_last,
                                preferred_element_type=jnp.float32)      # (P, d)
        # col term: bcol[p, j] = sum_k w2[p, k] * x2[t, j, k]
        bcol = jax.lax.dot_general(w2, x2_ref[t], contract_last,
                                   preferred_element_type=jnp.float32)   # (P, d)
        # out[p, i, j] = a[p, i] + bcol[p, j] + bias[p]
        o_ref[t] = ((a + bias)[:, :, None] + bcol[:, None, :]).astype(o_ref.dtype)


def _pick_batch_tile(B, K, d, P, itemsize=4, budget_bytes=8 << 20):
    # Double-buffered inputs (2 views of x) + output per batch element.
    per_batch = 2 * (2 * K * d + P * d * d) * itemsize
    bt = int(max(1, min(B, budget_bytes // max(per_batch, 1))))
    while B % bt:                             # keep the grid exact (no ragged tail)
        bt -= 1
    return bt


@functools.partial(jax.jit, static_argnames=())
def e2e_block(x, w1, b1, w2, b2):
    """x: (B, C, d, d); w1, w2: (P, C, d); b1, b2: (P,) -> (B, P, d, d)."""
    B, C, d, d2 = x.shape
    assert d == d2, "E2EBlock expects a square (d, d) connectivity input"
    P = w1.shape[0]
    K = C * d

    # Wrapper-side layout plumbing (cheap XLA transposes/reshapes):
    # contraction views of x with K on the last axis.
    x1 = jnp.transpose(x, (0, 2, 1, 3)).reshape(B, d, K)   # x1[b, i, c*d + j]
    x2 = jnp.transpose(x, (0, 3, 1, 2)).reshape(B, d, K)   # x2[b, j, c*d + i]
    w1f = w1.reshape(P, K)                                  # flatten (c, j)
    w2f = w2.reshape(P, K)                                  # flatten (c, i)
    bias = (b1 + b2).reshape(P, 1).astype(jnp.float32)

    bt = _pick_batch_tile(B, K, d, P)
    grid = (B // bt,)

    # TODO(synk): for large roi_num not a multiple of 128, pad d to 128 in the
    # wrapper (and slice after) to keep output stores fully lane-dense.

    out = pl.pallas_call(
        _e2e_kernel,
        out_shape=jax.ShapeDtypeStruct((B, P, d, d), x.dtype),
        grid=grid,
        in_specs=[
            pl.BlockSpec((bt, d, K), lambda b: (b, 0, 0)),
            pl.BlockSpec((bt, d, K), lambda b: (b, 0, 0)),
            pl.BlockSpec((P, K), lambda b: (0, 0)),      # weights stay resident
            pl.BlockSpec((P, K), lambda b: (0, 0)),
            pl.BlockSpec((P, 1), lambda b: (0, 0)),
        ],
        out_specs=pl.BlockSpec((bt, P, d, d), lambda b: (b, 0, 0, 0)),
        compiler_params=pltpu.CompilerParams(
            dimension_semantics=("parallel",),
        ),
        cost_estimate=pl.CostEstimate(
            flops=4 * B * P * K * d,                      # two matmuls per batch
            transcendentals=0,
            bytes_accessed=4 * (2 * B * K * d + 2 * P * K + P + B * P * d * d),
        ),
    )(x1, x2, w1f, w2f, bias)
    return out


if __name__ == "__main__":
    # Small shapes consistent with the module: (batch, in_planes, roi_num, roi_num).
    B, C, P, d = 2, 4, 8, 16
    key = jax.random.PRNGKey(0)
    kx, k1, k2, kb1, kb2 = jax.random.split(key, 5)
    x = jax.random.normal(kx, (B, C, d, d), dtype=jnp.float32)
    w1 = 0.1 * jax.random.normal(k1, (P, C, d), dtype=jnp.float32)   # cnn1 weight (P,C,1,d) squeezed
    w2 = 0.1 * jax.random.normal(k2, (P, C, d), dtype=jnp.float32)   # cnn2 weight (P,C,d,1) squeezed
    b1 = jax.random.normal(kb1, (P,), dtype=jnp.float32)
    b2 = jax.random.normal(kb2, (P,), dtype=jnp.float32)

    out = e2e_block(x, w1, b1, w2, b2)
    out = jax.block_until_ready(out)

    # Pure-JAX reference (same semantics as the torch module).
    a_ref = jnp.einsum("bcij,pcj->bpi", x, w1) + b1[None, :, None]
    b_ref = jnp.einsum("bcij,pci->bpj", x, w2) + b2[None, :, None]
    ref = a_ref[..., :, None] + b_ref[..., None, :]

    assert out.shape == (B, P, d, d), out.shape
    assert jnp.allclose(out, ref, atol=1e-4, rtol=1e-4), float(jnp.max(jnp.abs(out - ref)))

    print("KERNEL_OK")
</pallas_src>

<mosaic_0001>
module attributes {stable_mosaic.version = 11 : i64} {
  func.func @_e2e_kernel(%arg0: i32, %arg1: memref<2x16x64xf32, #tpu.memory_space<vmem>>, %arg2: memref<2x16x64xf32, #tpu.memory_space<vmem>>, %arg3: memref<8x64xf32, #tpu.memory_space<vmem>>, %arg4: memref<8x64xf32, #tpu.memory_space<vmem>>, %arg5: memref<8x1xf32, #tpu.memory_space<vmem>>, %arg6: memref<2x8x16x16xf32, #tpu.memory_space<vmem>>) attributes {dimension_semantics = [#tpu.dimension_semantics<parallel>], iteration_bounds = array<i64: 1>, scalar_prefetch = 0 : i64, scratch_operands = 0 : i64, tpu.core_type = #tpu.core_type<tc>, window_params = [{transform_indices = @transform_0, window_bounds = array<i64: 2, 16, 64>}, {transform_indices = @transform_1, window_bounds = array<i64: 2, 16, 64>}, {pipeline_mode = #tpu.pipeline_mode<synchronous>, transform_indices = @transform_2, window_bounds = array<i64: 8, 64>}, {pipeline_mode = #tpu.pipeline_mode<synchronous>, transform_indices = @transform_3, window_bounds = array<i64: 8, 64>}, {pipeline_mode = #tpu.pipeline_mode<synchronous>, transform_indices = @transform_4, window_bounds = array<i64: 8, 1>}, {transform_indices = @transform_5, window_bounds = array<i64: 2, 8, 16, 16>}]} {
    %c0 = arith.constant 0 : index
    %c0_0 = arith.constant 0 : index
    %0 = vector.load %arg3[%c0, %c0_0] : memref<8x64xf32, #tpu.memory_space<vmem>>, vector<8x64xf32>
    %c0_1 = arith.constant 0 : index
    %c0_2 = arith.constant 0 : index
    %1 = vector.load %arg4[%c0_1, %c0_2] : memref<8x64xf32, #tpu.memory_space<vmem>>, vector<8x64xf32>
    %c0_3 = arith.constant 0 : index
    %c0_4 = arith.constant 0 : index
    %2 = vector.load %arg5[%c0_3, %c0_4] : memref<8x1xf32, #tpu.memory_space<vmem>>, vector<8x1xf32>
    %c0_5 = arith.constant 0 : index
    %c0_6 = arith.constant 0 : index
    %c0_7 = arith.constant 0 : index
    %3 = vector.load %arg1[%c0_5, %c0_6, %c0_7] : memref<2x16x64xf32, #tpu.memory_space<vmem>>, vector<1x16x64xf32>
    %4 = vector.shape_cast %3 : vector<1x16x64xf32> to vector<16x64xf32>
    %cst = arith.constant dense<0.000000e+00> : vector<8x16xf32>
    %5 = tpu.matmul %0, %4, %cst {dimension_numbers = #tpu.dot_dimension_numbers<[1], [1], [0], [0], [0, 0, 1, 0], [], []>} : vector<8x64xf32>, vector<16x64xf32>, vector<8x16xf32> -> vector<8x16xf32>
    %c0_8 = arith.constant 0 : index
    %c0_9 = arith.constant 0 : index
    %c0_10 = arith.constant 0 : index
    %6 = vector.load %arg2[%c0_8, %c0_9, %c0_10] : memref<2x16x64xf32, #tpu.memory_space<vmem>>, vector<1x16x64xf32>
    %7 = vector.shape_cast %6 : vector<1x16x64xf32> to vector<16x64xf32>
    %cst_11 = arith.constant dense<0.000000e+00> : vector<8x16xf32>
    %8 = tpu.matmul %1, %7, %cst_11 {dimension_numbers = #tpu.dot_dimension_numbers<[1], [1], [0], [0], [0, 0, 1, 0], [], []>} : vector<8x64xf32>, vector<16x64xf32>, vector<8x16xf32> -> vector<8x16xf32>
    %9 = vector.broadcast %2 : vector<8x1xf32> to vector<8x16xf32>
    %10 = arith.addf %5, %9 : vector<8x16xf32>
    %11 = vector.shape_cast %10 : vector<8x16xf32> to vector<8x16x1xf32>
    %12 = vector.shape_cast %8 : vector<8x16xf32> to vector<8x1x16xf32>
    %13 = vector.broadcast %11 : vector<8x16x1xf32> to vector<8x16x16xf32>
    %14 = vector.broadcast %12 : vector<8x1x16xf32> to vector<8x16x16xf32>
    %15 = arith.addf %13, %14 : vector<8x16x16xf32>
    %c0_12 = arith.constant 0 : index
    %c0_13 = arith.constant 0 : index
    %c0_14 = arith.constant 0 : index
    %c0_15 = arith.constant 0 : index
    %16 = vector.load %arg6[%c0_12, %c0_13, %c0_14, %c0_15] : memref<2x8x16x16xf32, #tpu.memory_space<vmem>>, vector<1x8x16x16xf32>
    %17 = vector.shape_cast %16 : vector<1x8x16x16xf32> to vector<8x16x16xf32>
    %18 = vector.shape_cast %15 : vector<8x16x16xf32> to vector<1x8x16x16xf32>
    tpu.vector_store %arg6[%c0_12, %c0_13, %c0_14, %c0_15], %18 {strides = array<i32>} : memref<2x8x16x16xf32, #tpu.memory_space<vmem>>, vector<1x8x16x16xf32>,
    %c1 = arith.constant 1 : index
    %c0_16 = arith.constant 0 : index
    %c0_17 = arith.constant 0 : index
    %19 = vector.load %arg1[%c1, %c0_16, %c0_17] : memref<2x16x64xf32, #tpu.memory_space<vmem>>, vector<1x16x64xf32>
    %20 = vector.shape_cast %19 : vector<1x16x64xf32> to vector<16x64xf32>
    %cst_18 = arith.constant dense<0.000000e+00> : vector<8x16xf32>
    %21 = tpu.matmul %0, %20, %cst_18 {dimension_numbers = #tpu.dot_dimension_numbers<[1], [1], [0], [0], [0, 0, 1, 0], [], []>} : vector<8x64xf32>, vector<16x64xf32>, vector<8x16xf32> -> vector<8x16xf32>
    %c1_19 = arith.constant 1 : index
    %c0_20 = arith.constant 0 : index
    %c0_21 = arith.constant 0 : index
    %22 = vector.load %arg2[%c1_19, %c0_20, %c0_21] : memref<2x16x64xf32, #tpu.memory_space<vmem>>, vector<1x16x64xf32>
    %23 = vector.shape_cast %22 : vector<1x16x64xf32> to vector<16x64xf32>
    %cst_22 = arith.constant dense<0.000000e+00> : vector<8x16xf32>
    %24 = tpu.matmul %1, %23, %cst_22 {dimension_numbers = #tpu.dot_dimension_numbers<[1], [1], [0], [0], [0, 0, 1, 0], [], []>} : vector<8x64xf32>, vector<16x64xf32>, vector<8x16xf32> -> vector<8x16xf32>
    %25 = vector.broadcast %2 : vector<8x1xf32> to vector<8x16xf32>
    %26 = arith.addf %21, %25 : vector<8x16xf32>
    %27 = vector.shape_cast %26 : vector<8x16xf32> to vector<8x16x1xf32>
    %28 = vector.shape_cast %24 : vector<8x16xf32> to vector<8x1x16xf32>
    %29 = vector.broadcast %27 : vector<8x16x1xf32> to vector<8x16x16xf32>
    %30 = vector.broadcast %28 : vector<8x1x16xf32> to vector<8x16x16xf32>
    %31 = arith.addf %29, %30 : vector<8x16x16xf32>
    %c1_23 = arith.constant 1 : index
    %c0_24 = arith.constant 0 : index
    %c0_25 = arith.constant 0 : index
    %c0_26 = arith.constant 0 : index
    %32 = vector.load %arg6[%c1_23, %c0_24, %c0_25, %c0_26] : memref<2x8x16x16xf32, #tpu.memory_space<vmem>>, vector<1x8x16x16xf32>
    %33 = vector.shape_cast %32 : vector<1x8x16x16xf32> to vector<8x16x16xf32>
    %34 = vector.shape_cast %31 : vector<8x16x16xf32> to vector<1x8x16x16xf32>
    tpu.vector_store %arg6[%c1_23, %c0_24, %c0_25, %c0_26], %34 {strides = array<i32>} : memref<2x8x16x16xf32, #tpu.memory_space<vmem>>, vector<1x8x16x16xf32>,
    return
  }
  func.func @transform_0(%arg0: i32) -> (i32, i32, i32) {
    %c0_i32 = arith.constant 0 : i32
    %c0_i32_0 = arith.constant 0 : i32
    %c0_i32_1 = arith.constant 0 : i32
    return %arg0, %c0_i32, %c0_i32_0 : i32, i32, i32
  }
  func.func @transform_1(%arg0: i32) -> (i32, i32, i32) {
    %c0_i32 = arith.constant 0 : i32
    %c0_i32_0 = arith.constant 0 : i32
    %c0_i32_1 = arith.constant 0 : i32
    return %arg0, %c0_i32, %c0_i32_0 : i32, i32, i32
  }
  func.func @transform_2(%arg0: i32) -> (i32, i32) {
    %c0_i32 = arith.constant 0 : i32
    %c0_i32_0 = arith.constant 0 : i32
    %c0_i32_1 = arith.constant 0 : i32
    return %c0_i32, %c0_i32_0 : i32, i32
  }
  func.func @transform_3(%arg0: i32) -> (i32, i32) {
    %c0_i32 = arith.constant 0 : i32
    %c0_i32_0 = arith.constant 0 : i32
    %c0_i32_1 = arith.constant 0 : i32
    return %c0_i32, %c0_i32_0 : i32, i32
  }
  func.func @transform_4(%arg0: i32) -> (i32, i32) {
    %c0_i32 = arith.constant 0 : i32
    %c0_i32_0 = arith.constant 0 : i32
    %c0_i32_1 = arith.constant 0 : i32
    return %c0_i32, %c0_i32_0 : i32, i32
  }
  func.func @transform_5(%arg0: i32) -> (i32, i32, i32, i32) {
    %c0_i32 = arith.constant 0 : i32
    %c0_i32_0 = arith.constant 0 : i32
    %c0_i32_1 = arith.constant 0 : i32
    %c0_i32_2 = arith.constant 0 : i32
    return %arg0, %c0_i32, %c0_i32_0, %c0_i32_1 : i32, i32, i32, i32
  }
}

</mosaic_0001>

<bundles_post_ra>
// kernel: e2e_block.1
= control target key start
LH: loop header
LB: loop body
LE: loop exit
PB: predicated region body
PF: predicated region fallthrough
CT: control target
= control target key end

     0   :  { %vm28_vm0 = vcmask 523264   ;;  %v893_v2 = vmov 0.0|0.0   ;;  %vm894_vm2 = vmmov 0   ;;  %v895_v5 = vmov 0.0   ;;  %s1165_s0 = inlined_call_operand.vmem [shape: f32[2,16,64], index: 0, kind: input, shape index: {}]   ;;  %s1166_s1 = inlined_call_operand.vmem [shape: f32[2,16,64], index: 1, kind: input, shape index: {}]   ;;  %s1167_s2 = inlined_call_operand.vmem [shape: f32[8,64], index: 2, kind: input, shape index: {}]   ;;  %s1168_s3 = inlined_call_operand.vmem [shape: f32[8,64], index: 3, kind: input, shape index: {}]   ;;  %s1169_s4 = inlined_call_operand.vmem [shape: f32[8,1], index: 4, kind: input, shape index: {}]   ;;  %s1170_s5 = inlined_call_operand.hbm [shape: f32[2,8,16,16], index: 5, kind: output, shape index: {}]  }
   0x1   :  { %v24_v0 = vld [vmem:[%s1165_s0] sm:$0xff]  ;;  %v25_v1 = vld [vmem:[%s1165_s0 + $0x8] sm:$0xff]  ;;  %848 = vmatprep.subr.bf16.mxu1 %v893_v2  ;;  %vm939_vm1 = vmpackc.low %vm28_vm0, %vm28_vm0  ;;  %827 = vmatprep.mubr.msk.f32.mxu1 %vm894_vm2, %v895_v5  ;;  %v896_v6 = vmov 0  }
   0x2   :  { %v849_v4 = vpack.c.bf16 %v25_v1, %v24_v0  ;;  %868 = vset.pattern.permute.xlu0 %v896_v6  ;;  %v23_v7 = vld [vmem:[%s1169_s4] sm:$0xff]  ;;  %844 = vmatprep.subr.bf16.mxu0 %v893_v2  ;;  %v27_v9 = vld [vmem:[%s1166_s1 + $0x8] sm:$0xff]  ;;  %v794_v10 = vld [vmem:[%s1165_s0 + $0x10] sm:$0xff] }
   0x3   :  { %v26_v8 = vld [vmem:[%s1166_s1] sm:$0xff]  ;;  %110 = vperm.xlu0 %868, %v23_v7   ;;  %v795_v11 = vld [vmem:[%s1165_s0 + $0x18] sm:$0xff]  ;;  %820 = vmatprep.mubr.msk.f32.mxu0 %vm894_vm2, %v895_v5 }
   0x4   :  { %851 = vmatpush3.bf16.xpose.msk.msra.mxu1 %vm939_vm1, %v849_v4  ;;  %v845_v12 = vpack.c.bf16 %v27_v9, %v26_v8 }
   0x5   :  { %856 = vmatprep.subr.bf16.mxu1 %v893_v2 }
   0x6   :  { %10 = vsyncpa [#allocation3], 0  ;;  %847 = vmatpush3.bf16.xpose.msk.msra.mxu0 %vm939_vm1, %v845_v12  ;;  %v21_v13 = vld [vmem:[%s1167_s2] sm:$0xff]  ;;  %v857_v14 = vpack.c.bf16 %v795_v11, %v794_v10  ;;  %v796_v15 = vld [vmem:[%s1166_s1 + $0x10] sm:$0xff]  ;;  %v192_v19 = vlaneseq  ;;  %v897_v20 = vmov 1966171168  }
   0x7   :  { %852 = vmatprep.subr.bf16.mxu0 %v893_v2  ;;  %v797_v16 = vld [vmem:[%s1166_s1 + $0x18] sm:$0xff]  ;;  %v22_v17 = vld [vmem:[%s1168_s3] sm:$0xff]  ;;  %v283_v21 = vunpack.c.l.s4 %v897_v20  ;;  %vm386_vm3 = vcmask 130048   ;;  %s898_s1 = smov [#allocation2]  }
   0x8   :  { %v853_v18 = vpack.c.bf16 %v797_v16, %v796_v15  ;;  %v986_v22 = vshrl.u32 %v192_v19, 7  ;;  %s777_s2 = sshll.u32 %s898_s1, 4  ;;  %s778_s2 = int_to_ptr.vmem [resolvable:$true] %s777_s2 }
   0x9   :  { %v284_v23 = vunpack.c.0.s8 %v283_v21  ;;  %s869_s3 = scalar_lea.vmem %s778_s2, 4096  ;;  %p874_p1 = scmp.lt.s32.totalorder %s778_s2, %s778_s2 }
   0xa   :  { %v991_v25 = vsub.s32 0, %v986_v22  ;;  %v205_v31 = vsub.s32 1, %v986_v22  ;;  %v216_v36 = vsub.s32 2, %v986_v22  ;;  %v227_v49 = vsub.s32 3, %v986_v22  ;;  %p870_p0 = scmp.ne.s32.totalorder %s778_s2, %s869_s3  ;;  %p875_p2 = scmp.lt.s32.totalorder %s869_s3, %s869_s3 }
   0xb   :  { %828 = vmatmul.mubr.msk.f32.vlgmr.msra.gmra.mrb[0].mxu1 %vm28_vm0, %v21_v13  ;;  %v997_v29 = vsub.s32 %v284_v23, %v986_v22  ;;  %v238_v57 = vsub.s32 4, %v986_v22  ;;  %v249_v0 = vsub.s32 5, %v986_v22  ;;  %v260_v7 = vsub.s32 6, %v986_v22 }
   0xc   :  { %859 = vmatpush3.bf16.xpose.msk.msra.mxu1 %vm939_vm1, %v857_v14  ;;  %841 = vmatprep.mubr.msk.f32.mxu1 %vm894_vm2, %v895_v5  ;;  %v271_v11 = vsub.s32 7, %v986_v22  ;;  %p876_p3 = por %p875_p2, %p874_p1 }
   0xd   :  { %821 = vmatmul.mubr.msk.f32.vlgmr.msra.gmra.mrb[0].mxu0 %vm28_vm0, %v22_v17 }
   0xe   :  { %855 = vmatpush3.bf16.xpose.msk.msra.mxu0 %vm939_vm1, %v853_v18  ;;  %834 = vmatprep.mubr.msk.f32.mxu0 %vm894_vm2, %v895_v5  ;;  %p877_p4 = pnand %p876_p3, %p870_p0 }
  0x13   :  { %842 = vmatmul.mubr.msk.f32.vlgmr.msra.gmra.mrb[2].mxu1 %vm28_vm0, %v21_v13 }
  0x15   :  { %835 = vmatmul.mubr.msk.f32.vlgmr.msra.gmra.mrb[2].mxu0 %vm28_vm0, %v22_v17 }
  0x82   :  { %v988_v24 = vpop.permute.xlu0 %110 }
  0xde   :  { %v188_v26 = vpop.f32.mrb[0].mxu1 }
  0xdf   :  { %v994_v27 = vadd.f32 %v188_v26, %v988_v24  ;;  %v829_v28 = vpop.f32.mrb[1].mxu1 }
  0xe0   :  { %v104_v32 = vpop.f32.mrb[0].mxu0 }
  0xe1   :  { %v195_v30 = vrot.slane %v994_v27, %v991_v25  ;;  %v822_v33 = vpop.f32.mrb[1].mxu0  ;;  %v281_v34 = vcombine.high %v104_v32, %v104_v32  ;;  %v288_v35 = vrot.slane %v104_v32, %v997_v29  ;;  %v206_v37 = vrot.slane %v994_v27, %v205_v31 }
  0xe2   :  { %v217_v48 = vrot.slane %v994_v27, %v216_v36  ;;  %v228_v56 = vrot.slane %v994_v27, %v227_v49  ;;  %v239_v63 = vrot.slane %v994_v27, %v238_v57  ;;  %v250_v6 = vrot.slane %v994_v27, %v249_v0 }
  0xe3   :  { %201 = vbcast.lane.b32.xlu1 %v195_v30, 264  ;;  %197 = vbcast.lane.b32.xlu0 %v195_v30, 256  ;;  %v295_v38 = vrot.slane %v281_v34, %v997_v29  ;;  %v296_v39 = vcombine.high %v288_v35, %v288_v35  ;;  %v304_v40 = vrot.slane %v288_v35, %v997_v29 }
  0xe4   :  { %v261_v10 = vrot.slane %v994_v27, %v260_v7  ;;  %v272_v16 = vrot.slane %v994_v27, %v271_v11 }
  0xe5   :  { %v1010_v43 = vrot.slane %v304_v40, %v991_v25  ;;  %v297_v44 = vcombine.high %v295_v38, %v295_v38  ;;  %v318_v45 = vrot.slane %v296_v39, %v997_v29  ;;  %v326_v46 = vcombine.high %v304_v40, %v304_v40 }
  0xe6   :  { %v557_v41 = vpop.f32.mrb[2].mxu1  ;;  %v311_v47 = vrot.slane %v295_v38, %v997_v29 }
  0xe7   :  { %208 = vbcast.lane.b32.xlu1 %v206_v37, 256  ;;  %212 = vbcast.lane.b32.xlu0 %v206_v37, 264  ;;  %v843_v42 = vpop.f32.mrb[3].mxu1  ;;  %v1019_v50 = vrot.slane %v318_v45, %v991_v25  ;;  %v1022_v51 = vrot.slane %v326_v46, %v991_v25  ;;  %v328_v52 = vcombine.high %v318_v45, %v318_v45 }
  0xe8   :  { %v1025_v53 = vrot.slane %v311_v47, %v991_v25  ;;  %v325_v54 = vrot.slane %v297_v44, %v997_v29  ;;  %v327_v55 = vcombine.high %v311_v47, %v311_v47  ;;  %v481_v62 = vpop.f32.mrb[2].mxu0  ;;  %v558_v15 = vadd.f32 %v557_v41, %v988_v24 }
  0xe9   :  { %v1033_v58 = vrot.slane %v328_v52, %v991_v25  ;;  %v657_v1 = vrot.slane %v481_v62, %v997_v29  ;;  %v836_v3 = vpop.f32.mrb[3].mxu0  ;;  %v650_v13 = vcombine.high %v481_v62, %v481_v62 }
  0xea   :  { %v1036_v59 = vrot.slane %v325_v54, %v991_v25  ;;  %v1039_v60 = vrot.slane %v327_v55, %v991_v25  ;;  %v329_v61 = vcombine.high %v325_v54, %v325_v54  ;;  %v564_v20 = vrot.slane %v558_v15, %v991_v25 }
  0xeb   :  { %219 = vbcast.lane.b32.xlu1 %v217_v48, 256  ;;  %223 = vbcast.lane.b32.xlu0 %v217_v48, 264  ;;  %v665_v4 = vcombine.high %v657_v1, %v657_v1  ;;  %v673_v5 = vrot.slane %v657_v1, %v997_v29  ;;  %v664_v18 = vrot.slane %v650_v13, %v997_v29 }
  0xec   :  { %v1045_v2 = vrot.slane %v329_v61, %v991_v25  ;;  %v575_v26 = vrot.slane %v558_v15, %v205_v31  ;;  %v586_v30 = vrot.slane %v558_v15, %v216_v36  ;;  %v597_v34 = vrot.slane %v558_v15, %v227_v49 }
  0xed   :  { %v1051_v8 = vrot.slane %v673_v5, %v991_v25  ;;  %v687_v9 = vrot.slane %v665_v4, %v997_v29  ;;  %v695_v14 = vcombine.high %v673_v5, %v673_v5  ;;  %v666_v23 = vcombine.high %v664_v18, %v664_v18 }
  0xee   :  { %v680_v24 = vrot.slane %v664_v18, %v997_v29  ;;  %v608_v37 = vrot.slane %v558_v15, %v238_v57  ;;  %v619_v36 = vrot.slane %v558_v15, %v249_v0  ;;  %v630_v38 = vrot.slane %v558_v15, %v260_v7 }
  0xef   :  { %230 = vbcast.lane.b32.xlu1 %v228_v56, 256  ;;  %234 = vbcast.lane.b32.xlu0 %v228_v56, 264  ;;  %v1057_v12 = vrot.slane %v687_v9, %v991_v25  ;;  %v1062_v17 = vrot.slane %v695_v14, %v991_v25  ;;  %v697_v19 = vcombine.high %v687_v9, %v687_v9 }
  0xf0   :  { %v1073_v27 = vrot.slane %v680_v24, %v991_v25  ;;  %v694_v28 = vrot.slane %v666_v23, %v997_v29  ;;  %v696_v33 = vcombine.high %v680_v24, %v680_v24  ;;  %v641_v22 = vrot.slane %v558_v15, %v271_v11 }
  0xf1   :  { %v1067_v21 = vrot.slane %v697_v19, %v991_v25 }
  0xf2   :  { %v1079_v32 = vrot.slane %v694_v28, %v991_v25  ;;  %v1084_v31 = vrot.slane %v696_v33, %v991_v25  ;;  %v698_v35 = vcombine.high %v694_v28, %v694_v28 }
  0xf3   :  { %241 = vbcast.lane.b32.xlu1 %v239_v63, 256  ;;  %245 = vbcast.lane.b32.xlu0 %v239_v63, 264 }
  0xf4   :  { %v1087_v29 = vrot.slane %v698_v35, %v991_v25 }
  0xf7   :  { %252 = vbcast.lane.b32.xlu1 %v250_v6, 256  ;;  %256 = vbcast.lane.b32.xlu0 %v250_v6, 264 }
  0xfb   :  { %263 = vbcast.lane.b32.xlu1 %v261_v10, 256  ;;  %267 = vbcast.lane.b32.xlu0 %v261_v10, 264 }
  0xff   :  { %274 = vbcast.lane.b32.xlu1 %v272_v16, 256  ;;  %278 = vbcast.lane.b32.xlu0 %v272_v16, 264 }
 0x103   :  { %570 = vbcast.lane.b32.xlu0 %v564_v20, 264  ;;  %566 = vbcast.lane.b32.xlu1 %v564_v20, 256 }
 0x107   :  { %581 = vbcast.lane.b32.xlu0 %v575_v26, 264  ;;  %577 = vbcast.lane.b32.xlu1 %v575_v26, 256 }
 0x10b   :  { %592 = vbcast.lane.b32.xlu0 %v586_v30, 264  ;;  %588 = vbcast.lane.b32.xlu1 %v586_v30, 256 }
 0x10f   :  { %603 = vbcast.lane.b32.xlu0 %v597_v34, 264  ;;  %599 = vbcast.lane.b32.xlu1 %v597_v34, 256 }
 0x113   :  { %614 = vbcast.lane.b32.xlu0 %v608_v37, 264  ;;  %610 = vbcast.lane.b32.xlu1 %v608_v37, 256 }
 0x117   :  { %625 = vbcast.lane.b32.xlu0 %v619_v36, 264  ;;  %621 = vbcast.lane.b32.xlu1 %v619_v36, 256 }
 0x11b   :  { %636 = vbcast.lane.b32.xlu0 %v630_v38, 264  ;;  %632 = vbcast.lane.b32.xlu1 %v630_v38, 256 }
 0x11f   :  { %647 = vbcast.lane.b32.xlu0 %v641_v22, 264  ;;  %643 = vbcast.lane.b32.xlu1 %v641_v22, 256 }
 0x155   :  { %v202_v39 = vpop.permute.xlu1 %201  ;;  %v198_v40 = vpop.permute.xlu0 %197 }
 0x156   :  { %v371_v41 = vadd.f32 %v1010_v43, %v202_v39  ;;  %v370_v42 = vadd.f32 %v1010_v43, %v198_v40 }
 0x158   :  { %388 = vst.msk [vmem:[#allocation2 + $0x8] sm:$0xff] %vm386_vm3, %v371_v41  ;;  %387 = vst.msk [vmem:[#allocation2] sm:$0xff] %vm386_vm3, %v370_v42 }
 0x159   :  { %v209_v25 = vpop.permute.xlu1 %208  ;;  %v213_v44 = vpop.permute.xlu0 %212 }
 0x15a   :  { %v372_v45 = vadd.f32 %v1019_v50, %v209_v25  ;;  %v373_v46 = vadd.f32 %v1019_v50, %v213_v44 }
 0x15c   :  { %389 = vst.msk [vmem:[#allocation2 + $0x10] sm:$0xff] %vm386_vm3, %v372_v45  ;;  %390 = vst.msk [vmem:[#allocation2 + $0x18] sm:$0xff] %vm386_vm3, %v373_v46 }
 0x15d   :  { %v220_v47 = vpop.permute.xlu1 %219  ;;  %v224_v48 = vpop.permute.xlu0 %223 }
 0x15e   :  { %v374_v49 = vadd.f32 %v1022_v51, %v220_v47  ;;  %v375_v43 = vadd.f32 %v1022_v51, %v224_v48 }
 0x160   :  { %391 = vst.msk [vmem:[#allocation2 + $0x20] sm:$0xff] %vm386_vm3, %v374_v49  ;;  %392 = vst.msk [vmem:[#allocation2 + $0x28] sm:$0xff] %vm386_vm3, %v375_v43 }
 0x161   :  { %v231_v52 = vpop.permute.xlu1 %230  ;;  %v235_v54 = vpop.permute.xlu0 %234 }
 0x162   :  { %v376_v55 = vadd.f32 %v1033_v58, %v231_v52  ;;  %v377_v50 = vadd.f32 %v1033_v58, %v235_v54 }
 0x164   :  { %393 = vst.msk [vmem:[#allocation2 + $0x30] sm:$0xff] %vm386_vm3, %v376_v55  ;;  %394 = vst.msk [vmem:[#allocation2 + $0x38] sm:$0xff] %vm386_vm3, %v377_v50 }
 0x165   :  { %v242_v56 = vpop.permute.xlu1 %241  ;;  %v246_v57 = vpop.permute.xlu0 %245 }
 0x166   :  { %v378_v61 = vadd.f32 %v1025_v53, %v242_v56  ;;  %v379_v51 = vadd.f32 %v1025_v53, %v246_v57 }
 0x168   :  { %395 = vst.msk [vmem:[#allocation2 + $0x40] sm:$0xff] %vm386_vm3, %v378_v61  ;;  %396 = vst.msk [vmem:[#allocation2 + $0x48] sm:$0xff] %vm386_vm3, %v379_v51 }
 0x169   :  { %v253_v62 = vpop.permute.xlu1 %252  ;;  %v257_v63 = vpop.permute.xlu0 %256 }
 0x16a   :  { %v380_v0 = vadd.f32 %v1036_v59, %v253_v62  ;;  %v381_v58 = vadd.f32 %v1036_v59, %v257_v63 }
 0x16c   :  { %397 = vst.msk [vmem:[#allocation2 + $0x50] sm:$0xff] %vm386_vm3, %v380_v0  ;;  %398 = vst.msk [vmem:[#allocation2 + $0x58] sm:$0xff] %vm386_vm3, %v381_v58 }
 0x16d   :  { %v264_v1 = vpop.permute.xlu1 %263  ;;  %v268_v3 = vpop.permute.xlu0 %267 }
 0x16e   :  { %v382_v4 = vadd.f32 %v1039_v60, %v264_v1  ;;  %v383_v53 = vadd.f32 %v1039_v60, %v268_v3 }
 0x170   :  { %399 = vst.msk [vmem:[#allocation2 + $0x60] sm:$0xff] %vm386_vm3, %v382_v4  ;;  %400 = vst.msk [vmem:[#allocation2 + $0x68] sm:$0xff] %vm386_vm3, %v383_v53 }
 0x171   :  { %v275_v5 = vpop.permute.xlu1 %274  ;;  %v279_v6 = vpop.permute.xlu0 %278 }
 0x172   :  { %v384_v7 = vadd.f32 %v1045_v2, %v275_v5  ;;  %v385_v59 = vadd.f32 %v1045_v2, %v279_v6 }
 0x174   :  { %401 = vst.msk [vmem:[#allocation2 + $0x70] sm:$0xff] %vm386_vm3, %v384_v7  ;;  %402 = vst.msk [vmem:[#allocation2 + $0x78] sm:$0xff] %vm386_vm3, %v385_v59 }
 0x175   :  { %v571_v9 = vpop.permute.xlu0 %570  ;;  %v567_v10 = vpop.permute.xlu1 %566 }
 0x176   :  { %v740_v11 = vadd.f32 %v1051_v8, %v571_v9  ;;  %v739_v60 = vadd.f32 %v1051_v8, %v567_v10 }
 0x178   :  { %757 = vst.msk [vmem:[#allocation2 + $0x88] sm:$0xff] %vm386_vm3, %v740_v11  ;;  %756 = vst.msk [vmem:[#allocation2 + $0x80] sm:$0xff] %vm386_vm3, %v739_v60 }
 0x179   :  { %v582_v13 = vpop.permute.xlu0 %581  ;;  %v578_v14 = vpop.permute.xlu1 %577 }
 0x17a   :  { %v742_v15 = vadd.f32 %v1057_v12, %v582_v13  ;;  %v741_v2 = vadd.f32 %v1057_v12, %v578_v14 }
 0x17c   :  { %759 = vst.msk [vmem:[#allocation2 + $0x98] sm:$0xff] %vm386_vm3, %v742_v15  ;;  %758 = vst.msk [vmem:[#allocation2 + $0x90] sm:$0xff] %vm386_vm3, %v741_v2 }
 0x17d   :  { %v593_v16 = vpop.permute.xlu0 %592  ;;  %v589_v18 = vpop.permute.xlu1 %588 }
 0x17e   :  { %v744_v19 = vadd.f32 %v1062_v17, %v593_v16  ;;  %v743_v8 = vadd.f32 %v1062_v17, %v589_v18 }
 0x180   :  { %761 = vst.msk [vmem:[#allocation2 + $0xa8] sm:$0xff] %vm386_vm3, %v744_v19  ;;  %760 = vst.msk [vmem:[#allocation2 + $0xa0] sm:$0xff] %vm386_vm3, %v743_v8 }
 0x181   :  { %v604_v20 = vpop.permute.xlu0 %603  ;;  %v600_v23 = vpop.permute.xlu1 %599 }
 0x182   :  { %v746_v24 = vadd.f32 %v1067_v21, %v604_v20  ;;  %v745_v12 = vadd.f32 %v1067_v21, %v600_v23 }
 0x184   :  { %763 = vst.msk [vmem:[#allocation2 + $0xb8] sm:$0xff] %vm386_vm3, %v746_v24  ;;  %762 = vst.msk [vmem:[#allocation2 + $0xb0] sm:$0xff] %vm386_vm3, %v745_v12 }
 0x185   :  { %v615_v26 = vpop.permute.xlu0 %614  ;;  %v611_v28 = vpop.permute.xlu1 %610 }
 0x186   :  { %v748_v30 = vadd.f32 %v1073_v27, %v615_v26  ;;  %v747_v17 = vadd.f32 %v1073_v27, %v611_v28 }
 0x188   :  { %765 = vst.msk [vmem:[#allocation2 + $0xc8] sm:$0xff] %vm386_vm3, %v748_v30  ;;  %764 = vst.msk [vmem:[#allocation2 + $0xc0] sm:$0xff] %vm386_vm3, %v747_v17 }
 0x189   :  { %v626_v33 = vpop.permute.xlu0 %625  ;;  %v622_v34 = vpop.permute.xlu1 %621 }
 0x18a   :  { %v750_v35 = vadd.f32 %v1079_v32, %v626_v33  ;;  %v749_v21 = vadd.f32 %v1079_v32, %v622_v34 }
 0x18c   :  { %767 = vst.msk [vmem:[#allocation2 + $0xd8] sm:$0xff] %vm386_vm3, %v750_v35  ;;  %766 = vst.msk [vmem:[#allocation2 + $0xd0] sm:$0xff] %vm386_vm3, %v749_v21 }
 0x18d   :  { %v637_v37 = vpop.permute.xlu0 %636  ;;  %v633_v36 = vpop.permute.xlu1 %632 }
 0x18e   :  { %v752_v38 = vadd.f32 %v1084_v31, %v637_v37  ;;  %v751_v27 = vadd.f32 %v1084_v31, %v633_v36 }
 0x190   :  { %769 = vst.msk [vmem:[#allocation2 + $0xe8] sm:$0xff] %vm386_vm3, %v752_v38  ;;  %768 = vst.msk [vmem:[#allocation2 + $0xe0] sm:$0xff] %vm386_vm3, %v751_v27 }
 0x191   :  { %v648_v22 = vpop.permute.xlu0 %647  ;;  %v644_v39 = vpop.permute.xlu1 %643 }
 0x192   :  { %v754_v32 = vadd.f32 %v1087_v29, %v648_v22  ;;  %v753_v40 = vadd.f32 %v1087_v29, %v644_v39 }
 0x194   :  { %771 = vst.msk [vmem:[#allocation2 + $0xf8] sm:$0xff] %vm386_vm3, %v754_v32  ;;  %770 = vst.msk [vmem:[#allocation2 + $0xf0] sm:$0xff] %vm386_vm3, %v753_v40 }
 0x195   :  { %880 = shalt.err (!%p877_p4)
}
 0x196   :  { %s881_s15 = scalar_lea.hbm %s1170_s5, 4096 }
 0x197   :  { %p882_p5 = scmp.ne.s32.totalorder %s1170_s5, %s881_s15  ;;  %p885_p6 = scmp.lt.u32.totalorder %s881_s15, %s1170_s5 }
 0x199   :  { %p887_p7 = pnand %p885_p6, %p882_p5 }
 0x19b   :  { %890 = shalt.err (!%p887_p7)
}
 0x19c   :  { %s899_s20 = smov 128   ;;  %s900_s21 = smov 8  }
 0x19d   :  { %783 = dma.vmem_to_hbm [thread:$0]  %s778_s2, 4096, %s1170_s5, [#allocation3], %s899_s20, %s899_s20, %s900_s21  }
 0x19e   :  { %891 = dma.done.wait [#allocation3], 4096  }
 0x19f   :  { %892 = vsyncadd [#allocation3], 4294963200 }
 0x1a0   :  { %787 = vsyncpa [#allocation3], 1 }

</bundles_post_ra>
